<compile_context>
chip_gen: v7x
topology: tpu7x:2x2x1
jax: 0.10.0
libtpu: 0.0.40
codegen_flags: <defaults>
</compile_context>

<pallas_src>
import jax
import jax.numpy as jnp
from jax import lax
from jax.experimental import pallas as pl
from jax.experimental.pallas import tpu as pltpu

# ---- module config (mirrors DeepTextModel_batch __init__ args) -------------
N_LAYERS = 1
HIDDEN_DIM = 32
EMBED_DIM = 16
VOCAB_SIZE = 64
PADDING_IDX = 1
BIDIRECTIONAL = False
HEAD_LAYERS = [32, 16, 8]      # head_layers[0] == hidden_dim (asserted in torch)
NEG_SLOPE = 0.01               # torch.nn.LeakyReLU default negative_slope

BATCH = 16                     # example batch (processed as grid of 8-row chunks)
SEQ = 8
BATCH_TILE = 8                 # batch rows per grid step


def _leaky_relu(x):
    return jnp.where(x > 0, x, NEG_SLOPE * x)


# ---- Pallas kernel: fused embed-gather + LSTM recurrence + fc head ----------
def lstm_head_kernel(tok_ref, tbl_ref, whh_ref, w1_ref, b1_ref, w2_ref, b2_ref,
                     out_ref):
    # tok_ref : (S*Bt, 1) int32, time-major tokens for this batch chunk (row t*Bt + b)
    # tbl_ref : (V, 4H)  bf16   folded table  E @ W_ih^T + (b_ih + b_hh), gate order i|f|g|o
    # whh_ref : (H, 4H)  bf16   W_hh^T, gate order i|f|g|o along lanes
    # w1_ref  : (H,  H1) bf16,  b1_ref: (1, H1) f32
    # w2_ref  : (H1, H2) bf16,  b2_ref: (1, H2) f32
    # out_ref : (Bt, H2) f32
    SB = tok_ref.shape[0]
    V = tbl_ref.shape[0]
    H = whh_ref.shape[0]
    B = out_ref.shape[0]
    S = SB // B

    # -- fused embedding gather + input projection + bias for ALL timesteps at once:
    #    a single (S*Bt, V) @ (V, 4H) MXU matmul, entirely off the serial h-chain.
    tok = tok_ref[...]                                            # (S*Bt, 1) int32
    lane = lax.broadcasted_iota(jnp.int32, (SB, V), 1)            # (S*Bt, V)
    onehot = (tok == lane).astype(jnp.float32).astype(jnp.bfloat16)
    xg = jnp.dot(onehot, tbl_ref[...],
                 preferred_element_type=jnp.float32)              # (S*Bt, 4H) f32, 8 vregs live

    whh = whh_ref[...]                                            # hoisted (H, 4H) bf16

    h = jnp.zeros((B, H), jnp.float32)
    c = jnp.zeros((B, H), jnp.float32)

    # fully unrolled recurrence: ONE (B,H)@(H,4H) matmul and TWO full-tile
    # transcendentals per step; gate extraction is static lane slicing (XLU).
    for t in range(S):
        r0 = t * B
        gates = xg[r0:r0 + B, :] + jnp.dot(h.astype(jnp.bfloat16), whh,
                                           preferred_element_type=jnp.float32)  # (B, 4H)
        sig = jax.nn.sigmoid(gates)      # one full-vreg pass
        tng = jnp.tanh(gates)            # one full-vreg pass
        i_g = sig[:, 0:H]                # PyTorch LSTM gate order: i, f, g, o
        f_g = sig[:, H:2 * H]
        g_g = tng[:, 2 * H:3 * H]
        o_g = sig[:, 3 * H:4 * H]
        c = f_g * c + i_g * g_g
        h = o_g * jnp.tanh(c)

    # fc head: Linear -> LeakyReLU (Dropout = identity in eval, no batchnorm);
    # the torch head applies LeakyReLU after the last Linear as well.
    z1 = jnp.dot(h.astype(jnp.bfloat16), w1_ref[...],
                 preferred_element_type=jnp.float32) + b1_ref[...]
    a1 = _leaky_relu(z1)
    z2 = jnp.dot(a1.astype(jnp.bfloat16), w2_ref[...],
                 preferred_element_type=jnp.float32) + b2_ref[...]
    out_ref[...] = _leaky_relu(z2)       # (Bt, 8) masked store: tiny, accepted


# ---- one-time weight prep (run at model load, NOT per call) ------------------
def prepare_params(params):
    H = HIDDEN_DIM
    b4 = params["b_ih"] + params["b_hh"]                                   # (4H,)
    # Fold the embedding through the input projection.  The padding_idx row is zero,
    # so its folded row is exactly the bias -- identical to a zero embedding vector
    # passing through the LSTM input projection.
    tbl = params["embedding"].astype(jnp.float32) @ params["w_ih"].T + b4  # (V, 4H)
    return dict(
        tbl=tbl.astype(jnp.bfloat16),                        # (V, 4H)
        whh=params["w_hh"].T.astype(jnp.bfloat16),           # (H, 4H)
        w1=params["w1"].T.astype(jnp.bfloat16),              # (H, H1)
        b1=params["b1"].reshape(1, -1).astype(jnp.float32),  # (1, H1)
        w2=params["w2"].T.astype(jnp.bfloat16),              # (H1, H2)
        b2=params["b2"].reshape(1, -1).astype(jnp.float32),  # (1, H2)
    )


# ---- forward wrapper ---------------------------------------------------------
def deep_text_model_batch(tokens, prepared, *, batch_tile=BATCH_TILE):
    """tokens: (B, S) int32 token ids. Returns (B, HEAD_LAYERS[-1]) f32."""
    B, S = tokens.shape
    H = HIDDEN_DIM
    assert B % batch_tile == 0, "batch must be a multiple of batch_tile"
    Bt = batch_tile
    num_chunks = B // Bt

    V = prepared["tbl"].shape[0]
    H1 = prepared["w1"].shape[1]
    H2 = prepared["w2"].shape[1]

    # per-chunk time-major tokens: global row c*S*Bt + t*Bt + b == tokens[c*Bt + b, t]
    tok_tm = (tokens.astype(jnp.int32)
              .reshape(num_chunks, Bt, S)
              .transpose(0, 2, 1)
              .reshape(num_chunks * S * Bt, 1))

    def const2d(shape):
        # weights: same block every grid step -> stay VMEM-resident across the grid
        return pl.BlockSpec(shape, lambda i: (0, 0))

    out = pl.pallas_call(
        lstm_head_kernel,
        out_shape=jax.ShapeDtypeStruct((B, H2), jnp.float32),
        grid_spec=pltpu.PrefetchScalarGridSpec(
            num_scalar_prefetch=0,
            grid=(num_chunks,),
            in_specs=[
                pl.BlockSpec((S * Bt, 1), lambda i: (i, 0)),   # tokens, per chunk
                const2d((V, 4 * H)),                           # folded table
                const2d((H, 4 * H)),                           # W_hh^T
                const2d((H, H1)),                              # w1
                const2d((1, H1)),                              # b1
                const2d((H1, H2)),                             # w2
                const2d((1, H2)),                              # b2
            ],
            out_specs=pl.BlockSpec((Bt, H2), lambda i: (i, 0)),
        ),
        compiler_params=pltpu.CompilerParams(
            dimension_semantics=("parallel",)),                # v7x: split chunks across TCs
    )(tok_tm, prepared["tbl"], prepared["whh"],
      prepared["w1"], prepared["b1"], prepared["w2"], prepared["b2"])
    return out


# ---- deterministic parameter init (shapes from the torch module) ------------
def init_params(key):
    ks = jax.random.split(key, 10)
    H, E = HIDDEN_DIM, EMBED_DIM
    k_lstm = 1.0 / jnp.sqrt(jnp.float32(H))

    embedding = 0.1 * jax.random.normal(ks[0], (VOCAB_SIZE, E), jnp.float32)
    embedding = embedding.at[PADDING_IDX].set(0.0)               # padding_idx row = 0

    w_ih = jax.random.uniform(ks[1], (4 * H, E), jnp.float32, -k_lstm, k_lstm)
    w_hh = jax.random.uniform(ks[2], (4 * H, H), jnp.float32, -k_lstm, k_lstm)
    b_ih = jax.random.uniform(ks[3], (4 * H,), jnp.float32, -k_lstm, k_lstm)
    b_hh = jax.random.uniform(ks[4], (4 * H,), jnp.float32, -k_lstm, k_lstm)

    k1 = 1.0 / jnp.sqrt(jnp.float32(HEAD_LAYERS[0]))
    w1 = jax.random.uniform(ks[5], (HEAD_LAYERS[1], HEAD_LAYERS[0]), jnp.float32, -k1, k1)
    b1 = jax.random.uniform(ks[6], (HEAD_LAYERS[1],), jnp.float32, -k1, k1)

    k2 = 1.0 / jnp.sqrt(jnp.float32(HEAD_LAYERS[1]))
    w2 = jax.random.uniform(ks[7], (HEAD_LAYERS[2], HEAD_LAYERS[1]), jnp.float32, -k2, k2)
    b2 = jax.random.uniform(ks[8], (HEAD_LAYERS[2],), jnp.float32, -k2, k2)

    return dict(embedding=embedding, w_ih=w_ih, w_hh=w_hh, b_ih=b_ih, b_hh=b_hh,
                w1=w1, b1=b1, w2=w2, b2=b2)


if __name__ == "__main__":
    key = jax.random.PRNGKey(0)
    k_par, k_tok = jax.random.split(key)
    params = init_params(k_par)
    prepared = jax.tree_util.tree_map(jax.block_until_ready,
                                      prepare_params(params))   # one-time weight fold
    tokens = jax.random.randint(k_tok, (BATCH, SEQ), 0, VOCAB_SIZE, dtype=jnp.int32)

    out = deep_text_model_batch(tokens, prepared)
    jax.block_until_ready(out)
    assert out.shape == (BATCH, HEAD_LAYERS[-1])
    print("KERNEL_OK")
</pallas_src>

<mosaic_0001>
module attributes {stable_mosaic.version = 11 : i64} {
  func.func @lstm_head_kernel(%arg0: i32, %arg1: memref<64x1xi32, #tpu.memory_space<vmem>>, %arg2: memref<64x128xbf16, #tpu.memory_space<vmem>>, %arg3: memref<32x128xbf16, #tpu.memory_space<vmem>>, %arg4: memref<32x16xbf16, #tpu.memory_space<vmem>>, %arg5: memref<1x16xf32, #tpu.memory_space<vmem>>, %arg6: memref<16x8xbf16, #tpu.memory_space<vmem>>, %arg7: memref<1x8xf32, #tpu.memory_space<vmem>>, %arg8: memref<8x8xf32, #tpu.memory_space<vmem>>) attributes {dimension_semantics = [#tpu.dimension_semantics<parallel>], iteration_bounds = array<i64: 2>, scalar_prefetch = 0 : i64, scratch_operands = 0 : i64, tpu.core_type = #tpu.core_type<tc>, window_params = [{transform_indices = @transform_0, window_bounds = array<i64: 64, 1>}, {pipeline_mode = #tpu.pipeline_mode<synchronous>, transform_indices = @transform_1, window_bounds = array<i64: 64, 128>}, {pipeline_mode = #tpu.pipeline_mode<synchronous>, transform_indices = @transform_2, window_bounds = array<i64: 32, 128>}, {pipeline_mode = #tpu.pipeline_mode<synchronous>, transform_indices = @transform_3, window_bounds = array<i64: 32, 16>}, {pipeline_mode = #tpu.pipeline_mode<synchronous>, transform_indices = @transform_4, window_bounds = array<i64: 1, 16>}, {pipeline_mode = #tpu.pipeline_mode<synchronous>, transform_indices = @transform_5, window_bounds = array<i64: 16, 8>}, {pipeline_mode = #tpu.pipeline_mode<synchronous>, transform_indices = @transform_6, window_bounds = array<i64: 1, 8>}, {transform_indices = @transform_7, window_bounds = array<i64: 8, 8>}]} {
    %c0 = arith.constant 0 : index
    %c0_0 = arith.constant 0 : index
    %0 = vector.load %arg1[%c0, %c0_0] : memref<64x1xi32, #tpu.memory_space<vmem>>, vector<64x1xi32>
    %1 = tpu.iota {dimensions = array<i32: 1>} : vector<64x64xi32>
    %2 = vector.broadcast %0 : vector<64x1xi32> to vector<64x64xi32>
    %3 = arith.cmpi eq, %2, %1 : vector<64x64xi32>
    %4 = arith.extui %3 : vector<64x64xi1> to vector<64x64xi32>
    %5 = arith.sitofp %4 : vector<64x64xi32> to vector<64x64xf32>
    %6 = arith.truncf %5 : vector<64x64xf32> to vector<64x64xbf16>
    %c0_1 = arith.constant 0 : index
    %c0_2 = arith.constant 0 : index
    %7 = vector.load %arg2[%c0_1, %c0_2] : memref<64x128xbf16, #tpu.memory_space<vmem>>, vector<64x128xbf16>
    %cst = arith.constant dense<0.000000e+00> : vector<64x128xf32>
    %8 = tpu.matmul %6, %7, %cst {dimension_numbers = #tpu.dot_dimension_numbers<[1], [0], [0], [1], [0, 0, 1, 1], [], []>} : vector<64x64xbf16>, vector<64x128xbf16>, vector<64x128xf32> -> vector<64x128xf32>
    %c0_3 = arith.constant 0 : index
    %c0_4 = arith.constant 0 : index
    %9 = vector.load %arg3[%c0_3, %c0_4] : memref<32x128xbf16, #tpu.memory_space<vmem>>, vector<32x128xbf16>
    %cst_5 = arith.constant 0.000000e+00 : f32
    %10 = vector.broadcast %cst_5 : f32 to vector<8x32xf32>
    %cst_6 = arith.constant 0.000000e+00 : f32
    %11 = vector.broadcast %cst_6 : f32 to vector<8x32xf32>
    %12 = vector.extract_strided_slice %8 {offsets = [0, 0], sizes = [8, 128], strides = [1, 1]} : vector<64x128xf32> to vector<8x128xf32>
    %13 = arith.truncf %10 : vector<8x32xf32> to vector<8x32xbf16>
    %cst_7 = arith.constant dense<0.000000e+00> : vector<8x128xf32>
    %14 = tpu.matmul %13, %9, %cst_7 {dimension_numbers = #tpu.dot_dimension_numbers<[1], [0], [0], [1], [0, 0, 1, 1], [], []>} : vector<8x32xbf16>, vector<32x128xbf16>, vector<8x128xf32> -> vector<8x128xf32>
    %15 = arith.addf %12, %14 : vector<8x128xf32>
    %16 = arith.negf %15 : vector<8x128xf32>
    %17 = math.exp %16 : vector<8x128xf32>
    %cst_8 = arith.constant 1.000000e+00 : f32
    %18 = vector.broadcast %cst_8 : f32 to vector<8x128xf32>
    %19 = arith.addf %18, %17 : vector<8x128xf32>
    %20 = arith.divf %18, %19 : vector<8x128xf32>
    %21 = math.tanh %15 : vector<8x128xf32>
    %22 = vector.extract_strided_slice %20 {offsets = [0, 0], sizes = [8, 32], strides = [1, 1]} : vector<8x128xf32> to vector<8x32xf32>
    %23 = vector.extract_strided_slice %20 {offsets = [0, 32], sizes = [8, 32], strides = [1, 1]} : vector<8x128xf32> to vector<8x32xf32>
    %24 = vector.extract_strided_slice %21 {offsets = [0, 64], sizes = [8, 32], strides = [1, 1]} : vector<8x128xf32> to vector<8x32xf32>
    %25 = vector.extract_strided_slice %20 {offsets = [0, 96], sizes = [8, 32], strides = [1, 1]} : vector<8x128xf32> to vector<8x32xf32>
    %26 = arith.mulf %23, %11 : vector<8x32xf32>
    %27 = arith.mulf %22, %24 : vector<8x32xf32>
    %28 = arith.addf %26, %27 : vector<8x32xf32>
    %29 = math.tanh %28 : vector<8x32xf32>
    %30 = arith.mulf %25, %29 : vector<8x32xf32>
    %31 = vector.extract_strided_slice %8 {offsets = [8, 0], sizes = [8, 128], strides = [1, 1]} : vector<64x128xf32> to vector<8x128xf32>
    %32 = arith.truncf %30 : vector<8x32xf32> to vector<8x32xbf16>
    %cst_9 = arith.constant dense<0.000000e+00> : vector<8x128xf32>
    %33 = tpu.matmul %32, %9, %cst_9 {dimension_numbers = #tpu.dot_dimension_numbers<[1], [0], [0], [1], [0, 0, 1, 1], [], []>} : vector<8x32xbf16>, vector<32x128xbf16>, vector<8x128xf32> -> vector<8x128xf32>
    %34 = arith.addf %31, %33 : vector<8x128xf32>
    %35 = arith.negf %34 : vector<8x128xf32>
    %36 = math.exp %35 : vector<8x128xf32>
    %cst_10 = arith.constant 1.000000e+00 : f32
    %37 = vector.broadcast %cst_10 : f32 to vector<8x128xf32>
    %38 = arith.addf %37, %36 : vector<8x128xf32>
    %39 = arith.divf %37, %38 : vector<8x128xf32>
    %40 = math.tanh %34 : vector<8x128xf32>
    %41 = vector.extract_strided_slice %39 {offsets = [0, 0], sizes = [8, 32], strides = [1, 1]} : vector<8x128xf32> to vector<8x32xf32>
    %42 = vector.extract_strided_slice %39 {offsets = [0, 32], sizes = [8, 32], strides = [1, 1]} : vector<8x128xf32> to vector<8x32xf32>
    %43 = vector.extract_strided_slice %40 {offsets = [0, 64], sizes = [8, 32], strides = [1, 1]} : vector<8x128xf32> to vector<8x32xf32>
    %44 = vector.extract_strided_slice %39 {offsets = [0, 96], sizes = [8, 32], strides = [1, 1]} : vector<8x128xf32> to vector<8x32xf32>
    %45 = arith.mulf %42, %28 : vector<8x32xf32>
    %46 = arith.mulf %41, %43 : vector<8x32xf32>
    %47 = arith.addf %45, %46 : vector<8x32xf32>
    %48 = math.tanh %47 : vector<8x32xf32>
    %49 = arith.mulf %44, %48 : vector<8x32xf32>
    %50 = vector.extract_strided_slice %8 {offsets = [16, 0], sizes = [8, 128], strides = [1, 1]} : vector<64x128xf32> to vector<8x128xf32>
    %51 = arith.truncf %49 : vector<8x32xf32> to vector<8x32xbf16>
    %cst_11 = arith.constant dense<0.000000e+00> : vector<8x128xf32>
    %52 = tpu.matmul %51, %9, %cst_11 {dimension_numbers = #tpu.dot_dimension_numbers<[1], [0], [0], [1], [0, 0, 1, 1], [], []>} : vector<8x32xbf16>, vector<32x128xbf16>, vector<8x128xf32> -> vector<8x128xf32>
    %53 = arith.addf %50, %52 : vector<8x128xf32>
    %54 = arith.negf %53 : vector<8x128xf32>
    %55 = math.exp %54 : vector<8x128xf32>
    %cst_12 = arith.constant 1.000000e+00 : f32
    %56 = vector.broadcast %cst_12 : f32 to vector<8x128xf32>
    %57 = arith.addf %56, %55 : vector<8x128xf32>
    %58 = arith.divf %56, %57 : vector<8x128xf32>
    %59 = math.tanh %53 : vector<8x128xf32>
    %60 = vector.extract_strided_slice %58 {offsets = [0, 0], sizes = [8, 32], strides = [1, 1]} : vector<8x128xf32> to vector<8x32xf32>
    %61 = vector.extract_strided_slice %58 {offsets = [0, 32], sizes = [8, 32], strides = [1, 1]} : vector<8x128xf32> to vector<8x32xf32>
    %62 = vector.extract_strided_slice %59 {offsets = [0, 64], sizes = [8, 32], strides = [1, 1]} : vector<8x128xf32> to vector<8x32xf32>
    %63 = vector.extract_strided_slice %58 {offsets = [0, 96], sizes = [8, 32], strides = [1, 1]} : vector<8x128xf32> to vector<8x32xf32>
    %64 = arith.mulf %61, %47 : vector<8x32xf32>
    %65 = arith.mulf %60, %62 : vector<8x32xf32>
    %66 = arith.addf %64, %65 : vector<8x32xf32>
    %67 = math.tanh %66 : vector<8x32xf32>
    %68 = arith.mulf %63, %67 : vector<8x32xf32>
    %69 = vector.extract_strided_slice %8 {offsets = [24, 0], sizes = [8, 128], strides = [1, 1]} : vector<64x128xf32> to vector<8x128xf32>
    %70 = arith.truncf %68 : vector<8x32xf32> to vector<8x32xbf16>
    %cst_13 = arith.constant dense<0.000000e+00> : vector<8x128xf32>
    %71 = tpu.matmul %70, %9, %cst_13 {dimension_numbers = #tpu.dot_dimension_numbers<[1], [0], [0], [1], [0, 0, 1, 1], [], []>} : vector<8x32xbf16>, vector<32x128xbf16>, vector<8x128xf32> -> vector<8x128xf32>
    %72 = arith.addf %69, %71 : vector<8x128xf32>
    %73 = arith.negf %72 : vector<8x128xf32>
    %74 = math.exp %73 : vector<8x128xf32>
    %cst_14 = arith.constant 1.000000e+00 : f32
    %75 = vector.broadcast %cst_14 : f32 to vector<8x128xf32>
    %76 = arith.addf %75, %74 : vector<8x128xf32>
    %77 = arith.divf %75, %76 : vector<8x128xf32>
    %78 = math.tanh %72 : vector<8x128xf32>
    %79 = vector.extract_strided_slice %77 {offsets = [0, 0], sizes = [8, 32], strides = [1, 1]} : vector<8x128xf32> to vector<8x32xf32>
    %80 = vector.extract_strided_slice %77 {offsets = [0, 32], sizes = [8, 32], strides = [1, 1]} : vector<8x128xf32> to vector<8x32xf32>
    %81 = vector.extract_strided_slice %78 {offsets = [0, 64], sizes = [8, 32], strides = [1, 1]} : vector<8x128xf32> to vector<8x32xf32>
    %82 = vector.extract_strided_slice %77 {offsets = [0, 96], sizes = [8, 32], strides = [1, 1]} : vector<8x128xf32> to vector<8x32xf32>
    %83 = arith.mulf %80, %66 : vector<8x32xf32>
    %84 = arith.mulf %79, %81 : vector<8x32xf32>
    %85 = arith.addf %83, %84 : vector<8x32xf32>
    %86 = math.tanh %85 : vector<8x32xf32>
    %87 = arith.mulf %82, %86 : vector<8x32xf32>
    %88 = vector.extract_strided_slice %8 {offsets = [32, 0], sizes = [8, 128], strides = [1, 1]} : vector<64x128xf32> to vector<8x128xf32>
    %89 = arith.truncf %87 : vector<8x32xf32> to vector<8x32xbf16>
    %cst_15 = arith.constant dense<0.000000e+00> : vector<8x128xf32>
    %90 = tpu.matmul %89, %9, %cst_15 {dimension_numbers = #tpu.dot_dimension_numbers<[1], [0], [0], [1], [0, 0, 1, 1], [], []>} : vector<8x32xbf16>, vector<32x128xbf16>, vector<8x128xf32> -> vector<8x128xf32>
    %91 = arith.addf %88, %90 : vector<8x128xf32>
    %92 = arith.negf %91 : vector<8x128xf32>
    %93 = math.exp %92 : vector<8x128xf32>
    %cst_16 = arith.constant 1.000000e+00 : f32
    %94 = vector.broadcast %cst_16 : f32 to vector<8x128xf32>
    %95 = arith.addf %94, %93 : vector<8x128xf32>
    %96 = arith.divf %94, %95 : vector<8x128xf32>
    %97 = math.tanh %91 : vector<8x128xf32>
    %98 = vector.extract_strided_slice %96 {offsets = [0, 0], sizes = [8, 32], strides = [1, 1]} : vector<8x128xf32> to vector<8x32xf32>
    %99 = vector.extract_strided_slice %96 {offsets = [0, 32], sizes = [8, 32], strides = [1, 1]} : vector<8x128xf32> to vector<8x32xf32>
    %100 = vector.extract_strided_slice %97 {offsets = [0, 64], sizes = [8, 32], strides = [1, 1]} : vector<8x128xf32> to vector<8x32xf32>
    %101 = vector.extract_strided_slice %96 {offsets = [0, 96], sizes = [8, 32], strides = [1, 1]} : vector<8x128xf32> to vector<8x32xf32>
    %102 = arith.mulf %99, %85 : vector<8x32xf32>
    %103 = arith.mulf %98, %100 : vector<8x32xf32>
    %104 = arith.addf %102, %103 : vector<8x32xf32>
    %105 = math.tanh %104 : vector<8x32xf32>
    %106 = arith.mulf %101, %105 : vector<8x32xf32>
    %107 = vector.extract_strided_slice %8 {offsets = [40, 0], sizes = [8, 128], strides = [1, 1]} : vector<64x128xf32> to vector<8x128xf32>
    %108 = arith.truncf %106 : vector<8x32xf32> to vector<8x32xbf16>
    %cst_17 = arith.constant dense<0.000000e+00> : vector<8x128xf32>
    %109 = tpu.matmul %108, %9, %cst_17 {dimension_numbers = #tpu.dot_dimension_numbers<[1], [0], [0], [1], [0, 0, 1, 1], [], []>} : vector<8x32xbf16>, vector<32x128xbf16>, vector<8x128xf32> -> vector<8x128xf32>
    %110 = arith.addf %107, %109 : vector<8x128xf32>
    %111 = arith.negf %110 : vector<8x128xf32>
    %112 = math.exp %111 : vector<8x128xf32>
    %cst_18 = arith.constant 1.000000e+00 : f32
    %113 = vector.broadcast %cst_18 : f32 to vector<8x128xf32>
    %114 = arith.addf %113, %112 : vector<8x128xf32>
    %115 = arith.divf %113, %114 : vector<8x128xf32>
    %116 = math.tanh %110 : vector<8x128xf32>
    %117 = vector.extract_strided_slice %115 {offsets = [0, 0], sizes = [8, 32], strides = [1, 1]} : vector<8x128xf32> to vector<8x32xf32>
    %118 = vector.extract_strided_slice %115 {offsets = [0, 32], sizes = [8, 32], strides = [1, 1]} : vector<8x128xf32> to vector<8x32xf32>
    %119 = vector.extract_strided_slice %116 {offsets = [0, 64], sizes = [8, 32], strides = [1, 1]} : vector<8x128xf32> to vector<8x32xf32>
    %120 = vector.extract_strided_slice %115 {offsets = [0, 96], sizes = [8, 32], strides = [1, 1]} : vector<8x128xf32> to vector<8x32xf32>
    %121 = arith.mulf %118, %104 : vector<8x32xf32>
    %122 = arith.mulf %117, %119 : vector<8x32xf32>
    %123 = arith.addf %121, %122 : vector<8x32xf32>
    %124 = math.tanh %123 : vector<8x32xf32>
    %125 = arith.mulf %120, %124 : vector<8x32xf32>
    %126 = vector.extract_strided_slice %8 {offsets = [48, 0], sizes = [8, 128], strides = [1, 1]} : vector<64x128xf32> to vector<8x128xf32>
    %127 = arith.truncf %125 : vector<8x32xf32> to vector<8x32xbf16>
    %cst_19 = arith.constant dense<0.000000e+00> : vector<8x128xf32>
    %128 = tpu.matmul %127, %9, %cst_19 {dimension_numbers = #tpu.dot_dimension_numbers<[1], [0], [0], [1], [0, 0, 1, 1], [], []>} : vector<8x32xbf16>, vector<32x128xbf16>, vector<8x128xf32> -> vector<8x128xf32>
    %129 = arith.addf %126, %128 : vector<8x128xf32>
    %130 = arith.negf %129 : vector<8x128xf32>
    %131 = math.exp %130 : vector<8x128xf32>
    %cst_20 = arith.constant 1.000000e+00 : f32
    %132 = vector.broadcast %cst_20 : f32 to vector<8x128xf32>
    %133 = arith.addf %132, %131 : vector<8x128xf32>
    %134 = arith.divf %132, %133 : vector<8x128xf32>
    %135 = math.tanh %129 : vector<8x128xf32>
    %136 = vector.extract_strided_slice %134 {offsets = [0, 0], sizes = [8, 32], strides = [1, 1]} : vector<8x128xf32> to vector<8x32xf32>
    %137 = vector.extract_strided_slice %134 {offsets = [0, 32], sizes = [8, 32], strides = [1, 1]} : vector<8x128xf32> to vector<8x32xf32>
    %138 = vector.extract_strided_slice %135 {offsets = [0, 64], sizes = [8, 32], strides = [1, 1]} : vector<8x128xf32> to vector<8x32xf32>
    %139 = vector.extract_strided_slice %134 {offsets = [0, 96], sizes = [8, 32], strides = [1, 1]} : vector<8x128xf32> to vector<8x32xf32>
    %140 = arith.mulf %137, %123 : vector<8x32xf32>
    %141 = arith.mulf %136, %138 : vector<8x32xf32>
    %142 = arith.addf %140, %141 : vector<8x32xf32>
    %143 = math.tanh %142 : vector<8x32xf32>
    %144 = arith.mulf %139, %143 : vector<8x32xf32>
    %145 = vector.extract_strided_slice %8 {offsets = [56, 0], sizes = [8, 128], strides = [1, 1]} : vector<64x128xf32> to vector<8x128xf32>
    %146 = arith.truncf %144 : vector<8x32xf32> to vector<8x32xbf16>
    %cst_21 = arith.constant dense<0.000000e+00> : vector<8x128xf32>
    %147 = tpu.matmul %146, %9, %cst_21 {dimension_numbers = #tpu.dot_dimension_numbers<[1], [0], [0], [1], [0, 0, 1, 1], [], []>} : vector<8x32xbf16>, vector<32x128xbf16>, vector<8x128xf32> -> vector<8x128xf32>
    %148 = arith.addf %145, %147 : vector<8x128xf32>
    %149 = arith.negf %148 : vector<8x128xf32>
    %150 = math.exp %149 : vector<8x128xf32>
    %cst_22 = arith.constant 1.000000e+00 : f32
    %151 = vector.broadcast %cst_22 : f32 to vector<8x128xf32>
    %152 = arith.addf %151, %150 : vector<8x128xf32>
    %153 = arith.divf %151, %152 : vector<8x128xf32>
    %154 = math.tanh %148 : vector<8x128xf32>
    %155 = vector.extract_strided_slice %153 {offsets = [0, 0], sizes = [8, 32], strides = [1, 1]} : vector<8x128xf32> to vector<8x32xf32>
    %156 = vector.extract_strided_slice %153 {offsets = [0, 32], sizes = [8, 32], strides = [1, 1]} : vector<8x128xf32> to vector<8x32xf32>
    %157 = vector.extract_strided_slice %154 {offsets = [0, 64], sizes = [8, 32], strides = [1, 1]} : vector<8x128xf32> to vector<8x32xf32>
    %158 = vector.extract_strided_slice %153 {offsets = [0, 96], sizes = [8, 32], strides = [1, 1]} : vector<8x128xf32> to vector<8x32xf32>
    %159 = arith.mulf %156, %142 : vector<8x32xf32>
    %160 = arith.mulf %155, %157 : vector<8x32xf32>
    %161 = arith.addf %159, %160 : vector<8x32xf32>
    %162 = math.tanh %161 : vector<8x32xf32>
    %163 = arith.mulf %158, %162 : vector<8x32xf32>
    %164 = arith.truncf %163 : vector<8x32xf32> to vector<8x32xbf16>
    %c0_23 = arith.constant 0 : index
    %c0_24 = arith.constant 0 : index
    %165 = vector.load %arg4[%c0_23, %c0_24] : memref<32x16xbf16, #tpu.memory_space<vmem>>, vector<32x16xbf16>
    %cst_25 = arith.constant dense<0.000000e+00> : vector<8x16xf32>
    %166 = tpu.matmul %164, %165, %cst_25 {dimension_numbers = #tpu.dot_dimension_numbers<[1], [0], [0], [1], [0, 0, 1, 1], [], []>} : vector<8x32xbf16>, vector<32x16xbf16>, vector<8x16xf32> -> vector<8x16xf32>
    %c0_26 = arith.constant 0 : index
    %c0_27 = arith.constant 0 : index
    %167 = vector.load %arg5[%c0_26, %c0_27] : memref<1x16xf32, #tpu.memory_space<vmem>>, vector<1x16xf32>
    %168 = vector.broadcast %167 : vector<1x16xf32> to vector<8x16xf32>
    %169 = arith.addf %166, %168 : vector<8x16xf32>
    %cst_28 = arith.constant 0.000000e+00 : f32
    %170 = vector.broadcast %cst_28 : f32 to vector<8x16xf32>
    %171 = arith.cmpf ogt, %169, %170 : vector<8x16xf32>
    %cst_29 = arith.constant 0.00999999977 : f32
    %172 = vector.broadcast %cst_29 : f32 to vector<8x16xf32>
    %173 = arith.mulf %172, %169 : vector<8x16xf32>
    %174 = arith.select %171, %169, %173 : vector<8x16xi1>, vector<8x16xf32>
    %175 = arith.truncf %174 : vector<8x16xf32> to vector<8x16xbf16>
    %c0_30 = arith.constant 0 : index
    %c0_31 = arith.constant 0 : index
    %176 = vector.load %arg6[%c0_30, %c0_31] : memref<16x8xbf16, #tpu.memory_space<vmem>>, vector<16x8xbf16>
    %cst_32 = arith.constant dense<0.000000e+00> : vector<8x8xf32>
    %177 = tpu.matmul %175, %176, %cst_32 {dimension_numbers = #tpu.dot_dimension_numbers<[1], [0], [0], [1], [0, 0, 1, 1], [], []>} : vector<8x16xbf16>, vector<16x8xbf16>, vector<8x8xf32> -> vector<8x8xf32>
    %c0_33 = arith.constant 0 : index
    %c0_34 = arith.constant 0 : index
    %178 = vector.load %arg7[%c0_33, %c0_34] : memref<1x8xf32, #tpu.memory_space<vmem>>, vector<1x8xf32>
    %179 = vector.broadcast %178 : vector<1x8xf32> to vector<8x8xf32>
    %180 = arith.addf %177, %179 : vector<8x8xf32>
    %cst_35 = arith.constant 0.000000e+00 : f32
    %181 = vector.broadcast %cst_35 : f32 to vector<8x8xf32>
    %182 = arith.cmpf ogt, %180, %181 : vector<8x8xf32>
    %cst_36 = arith.constant 0.00999999977 : f32
    %183 = vector.broadcast %cst_36 : f32 to vector<8x8xf32>
    %184 = arith.mulf %183, %180 : vector<8x8xf32>
    %185 = arith.select %182, %180, %184 : vector<8x8xi1>, vector<8x8xf32>
    %c0_37 = arith.constant 0 : index
    %c0_38 = arith.constant 0 : index
    %186 = vector.load %arg8[%c0_37, %c0_38] : memref<8x8xf32, #tpu.memory_space<vmem>>, vector<8x8xf32>
    tpu.vector_store %arg8[%c0_37, %c0_38], %185 {strides = array<i32>} : memref<8x8xf32, #tpu.memory_space<vmem>>, vector<8x8xf32>,
    return
  }
  func.func @transform_0(%arg0: i32) -> (i32, i32) {
    %c0_i32 = arith.constant 0 : i32
    %c0_i32_0 = arith.constant 0 : i32
    return %arg0, %c0_i32 : i32, i32
  }
  func.func @transform_1(%arg0: i32) -> (i32, i32) {
    %c0_i32 = arith.constant 0 : i32
    %c0_i32_0 = arith.constant 0 : i32
    %c0_i32_1 = arith.constant 0 : i32
    return %c0_i32, %c0_i32_0 : i32, i32
  }
  func.func @transform_2(%arg0: i32) -> (i32, i32) {
    %c0_i32 = arith.constant 0 : i32
    %c0_i32_0 = arith.constant 0 : i32
    %c0_i32_1 = arith.constant 0 : i32
    return %c0_i32, %c0_i32_0 : i32, i32
  }
  func.func @transform_3(%arg0: i32) -> (i32, i32) {
    %c0_i32 = arith.constant 0 : i32
    %c0_i32_0 = arith.constant 0 : i32
    %c0_i32_1 = arith.constant 0 : i32
    return %c0_i32, %c0_i32_0 : i32, i32
  }
  func.func @transform_4(%arg0: i32) -> (i32, i32) {
    %c0_i32 = arith.constant 0 : i32
    %c0_i32_0 = arith.constant 0 : i32
    %c0_i32_1 = arith.constant 0 : i32
    return %c0_i32, %c0_i32_0 : i32, i32
  }
  func.func @transform_5(%arg0: i32) -> (i32, i32) {
    %c0_i32 = arith.constant 0 : i32
    %c0_i32_0 = arith.constant 0 : i32
    %c0_i32_1 = arith.constant 0 : i32
    return %c0_i32, %c0_i32_0 : i32, i32
  }
  func.func @transform_6(%arg0: i32) -> (i32, i32) {
    %c0_i32 = arith.constant 0 : i32
    %c0_i32_0 = arith.constant 0 : i32
    %c0_i32_1 = arith.constant 0 : i32
    return %c0_i32, %c0_i32_0 : i32, i32
  }
  func.func @transform_7(%arg0: i32) -> (i32, i32) {
    %c0_i32 = arith.constant 0 : i32
    %c0_i32_0 = arith.constant 0 : i32
    return %arg0, %c0_i32 : i32, i32
  }
}

</mosaic_0001>

<bundles_post_ra>
// kernel: tpu_custom_call.1
= control target key start
LH: loop header
LB: loop body
LE: loop exit
PB: predicated region body
PF: predicated region fallthrough
CT: control target
= control target key end

     0   :  { %s1554_s24 = smov 0   ;;  %s1755_s0 = inlined_call_operand.vmem [shape: s32[128,1], index: 0, kind: input, shape index: {}]   ;;  %s1756_s1 = inlined_call_operand.vmem [shape: bf16[64,128], index: 1, kind: input, shape index: {}]   ;;  %s1757_s2 = inlined_call_operand.vmem [shape: bf16[32,128], index: 2, kind: input, shape index: {}]   ;;  %s1758_s3 = inlined_call_operand.vmem [shape: bf16[32,16], index: 3, kind: input, shape index: {}]   ;;  %s1759_s4 = inlined_call_operand.vmem [shape: f32[1,16], index: 4, kind: input, shape index: {}]   ;;  %s1760_s5 = inlined_call_operand.vmem [shape: bf16[16,8], index: 5, kind: input, shape index: {}]   ;;  %s1761_s6 = inlined_call_operand.vmem [shape: f32[1,8], index: 6, kind: input, shape index: {}]   ;;  %s1762_s7 = inlined_call_operand.vmem [shape: f32[16,8], index: 7, kind: output, shape index: {}]  }
   0x1 LB: > { %s1560_s25 = sadd.s32 4294967295, %s1507_s24   ;;  %p1236_p0 = scmp.ge.s32.totalorder %s1507_s24, 1  ;;  %s1507_s24 = sphi %s1554_s24, %s17_s24  }
   0x2   : > { %p238_p1 = scmp.lt.s32.totalorder %s1507_s24, 3 }
   0x4   : > { %p239_p2 = pnand %p1236_p0, %p238_p1 }
   0x5   : > { %s1237_s26 = sshll.u32 (!%p239_p2), %s1560_s25, 3  ;;  %v1509_v0 = vmov (!%p239_p2), 0   ;;  %v1428_v1 = vld [vmem:[%s1756_s1] sm:$0xff] (!%p239_p2)   ;;  %v1429_v2 = vld [vmem:[%s1756_s1 + $0x8] sm:$0xff] (!%p239_p2)   ;;  %v1510_v3 = vmov (!%p239_p2), 0.0   ;;  %v1431_v9 = vld [vmem:[%s1756_s1 + $0x10] sm:$0xff] (!%p239_p2)   ;;  %v288_v12 = vlaneseq (!%p239_p2) }
   0x6   : > { %242 = sbr.rel (%p239_p2) target bundleno = 6224 (0x1850), region = 48  ;;  %1427 = vset.pattern.permute.xlu1 (!%p239_p2), %v1509_v0  ;;  %1426 = vset.pattern.permute.xlu0 (!%p239_p2), %v1509_v0  ;;  %p270_p3 = scmp.lt.s32.totalorder (!%p239_p2), %s1237_s26, 15  ;;  %v1580_v4 = vld [vmem:[%s1757_s2] sm:$0xff] (!%p239_p2)   ;;  %v1594_v10 = vld [vmem:[%s1757_s2 + $0x8] sm:$0xff] (!%p239_p2)   ;;  %v1433_v11 = vld [vmem:[%s1756_s1 + $0x18] sm:$0xff] (!%p239_p2)   ;;  %vm1511_vm0 = vmmov (!%p239_p2), 0  }
   0x7   : > { %1319 = vmatprep.subr.bf16.mxu0 (!%p239_p2), %v1428_v1  ;;  %1335 = vmatprep.subr.bf16.mxu1 (!%p239_p2), %v1510_v3  ;;  %v1610_v13 = vand.u32 (!%p239_p2), 127, %v288_v12  ;;  %vm374_vm5 = vcmask (!%p239_p2), 523264   ;;  %s1512_s20 = smov (!%p239_p2), 64   ;;  %s1513_s21 = smov (!%p239_p2), 32   ;;  %vm468_vm6 = vcmask (!%p239_p2), 261120   ;;  %vm1130_vm12 = vcmask (!%p239_p2), 130048  }
   0x8   : > { %1320 = vmatpush3.bf16.msra.mxu0 (!%p239_p2), %v1428_v1  ;;  %1336 = vmatpush3.bf16.msra.mxu1 (!%p239_p2), %v1580_v4  ;;  %p275_p4 = scmp.lt.s32.totalorder (!%p239_p2), %s1560_s25, 1  ;;  %vm1177_vm14 = vcmask (!%p239_p2), 64512  }
   0x9   : > { %1321 = vmatprep.subr.bf16.mxu0 (!%p239_p2), %v1429_v2  ;;  %1337 = vmatprep.subr.bf16.mxu1 (!%p239_p2), %v1510_v3 }
   0xa   : > { %1339 = vmatprep.mubr.msk.bf16.mxu1 (!%p239_p2), %vm1511_vm0, %v1510_v3 }
   0xc   : > { %1322 = vmatpush3.bf16.msra.mxu0 (!%p239_p2), %v1429_v2  ;;  %1338 = vmatpush3.bf16.msra.mxu1 (!%p239_p2), %v1594_v10 }
   0xd   : > { %s1764_s26 = smov (!%p270_p3, %s1237_s26), 15  ;;  %1323 = vmatprep.subr.bf16.mxu0 %v1431_v9  ;;  %1343 = vmatprep.subr.bf16.mxu1 %v1510_v3  ;;  %s1766_s25 = smov (!%p275_p4, %s1560_s25), 1 }
   0xe   : > { %s1238_s8 = sshll.u32 %s1764_s26, 3 }
   0xf   : > { %s1575_s11 = scalar_lea.vmem %s1755_s0, %s1238_s8  ;;  %1340 = vmatmul.mubr.bf16.vlgmr.msra.gmra.mrb[0].mxu1 %v1509_v0 }
  0x10   : > { %v282_v5 = vld [vmem:[%s1575_s11 + $0x10] sm:$0xff]  ;;  %v280_v6 = vld [vmem:[%s1575_s11] sm:$0xff]  ;;  %v283_v7 = vld [vmem:[%s1575_s11 + $0x18] sm:$0xff]  ;;  %1324 = vmatpush3.bf16.msra.mxu0 %v1431_v9  ;;  %1344 = vmatpush3.bf16.msra.mxu1 %v1580_v4 }
  0x11   : > { %297 = vperm.xlu1 %1427, %v282_v5   ;;  %291 = vperm.xlu0 %1426, %v280_v6   ;;  %v281_v8 = vld [vmem:[%s1575_s11 + $0x8] sm:$0xff] }
  0x12   : > { %1325 = vmatprep.subr.bf16.mxu0 %v1433_v11  ;;  %1345 = vmatprep.subr.bf16.mxu1 %v1510_v3 }
  0x13   : > { %1347 = vmatprep.mubr.msk.bf16.mxu1 %vm1511_vm0, %v1510_v3 }
  0x14   : > { %1326 = vmatpush3.bf16.msra.mxu0 %v1433_v11  ;;  %1346 = vmatpush3.bf16.msra.mxu1 %v1594_v10 }
  0x15   : > { %300 = vperm.xlu1 %1427, %v283_v7   ;;  %294 = vperm.xlu0 %1426, %v281_v8  }
  0x16   : > { %1359 = vmatprep.subr.bf16.mxu0 %v1510_v3  ;;  %1351 = vmatprep.subr.bf16.mxu1 %v1510_v3 }
  0x90   : > { %v298_v14 = vpop.permute.xlu1 %297  ;;  %v292_v15 = vpop.permute.xlu0 %291 }
  0x91   : > { %vm316_vm1 = vcmp.eq.s32.totalorder %v298_v14, %v1610_v13  ;;  %vm314_vm2 = vcmp.eq.s32.totalorder %v292_v15, %v1610_v13 }
  0x92   : > { %v1242_v18 = vsel %vm316_vm1, 1.0, %v1510_v3  ;;  %v1240_v19 = vsel %vm314_vm2, 1.0, %v1510_v3 }
  0x94   : > { %v301_v16 = vpop.permute.xlu1 %300  ;;  %v295_v17 = vpop.permute.xlu0 %294 }
  0x95   : > { %vm317_vm3 = vcmp.eq.s32.totalorder %v301_v16, %v1610_v13  ;;  %vm315_vm4 = vcmp.eq.s32.totalorder %v295_v17, %v1610_v13 }
  0x96   : > { %v1243_v20 = vsel %vm317_vm3, 1.0, %v1510_v3  ;;  %v1241_v21 = vsel %vm315_vm4, 1.0, %v1510_v3 }
  0x97   : > { %v339_v22 = vpack.c.bf16 %v1243_v20, %v1242_v18  ;;  %v338_v23 = vpack.c.bf16 %v1241_v21, %v1240_v19  ;;  %v284_v20 = vld [vmem:[%s1575_s11 + $0x20] sm:$0xff]  ;;  %v286_v21 = vld [vmem:[%s1575_s11 + $0x30] sm:$0xff] }
  0x99   : > { %1327 = vmatprep.mubr.msk.bf16.mxu0 %vm374_vm5, %v338_v23 }
  0x9a   : > { %1328 = vmatmul.mubr.msk.bf16.vlgmr.msra.gmra.mrb[0].mxu0 %vm374_vm5, %v339_v22 }
  0x9b   : > { %1360 = vmatpush3.bf16.msra.mxu0 %v1580_v4 }
  0x9c   : > { %1361 = vmatprep.subr.bf16.mxu0 %v1510_v3 }
  0x9f   : > { %1362 = vmatpush3.bf16.msra.mxu0 %v1594_v10 }
  0xa0   : > { %1375 = vmatprep.subr.bf16.mxu0 %v1510_v3 }
  0xe2   : > { %v506_v24 = vpop.f32.mrb[0].mxu1 }
  0xe3   : > { %v1341_v25 = vpop.f32.mrb[1].mxu1 }
  0xe4   : > { %v509_v26 = vpop.f32.mrb[2].mxu1 }
  0xe5   : > { %v1342_v27 = vpop.f32.mrb[3].mxu1  ;;  %v285_v26 = vld [vmem:[%s1575_s11 + $0x28] sm:$0xff] }
  0xe6   : > { %v287_v27 = vld [vmem:[%s1575_s11 + $0x38] sm:$0xff]  ;;  %s1239_s11 = sshll.u32 %s1766_s25, 3 }
  0xe7   : > { %s278_s14 = scalar_lea.vmem %s1762_s7, %s1239_s11 }
 0x16d   : > { %v1626_v28 = vpop.f32.mrb[0].mxu0 }
 0x16e   : > { %v421_v29 = vpop.f32.mrb[1].mxu0 }
 0x16f   : > { %v512_v30 = vadd.f32 %v506_v24, %v421_v29  ;;  %v1628_v31 = vpop.f32.mrb[2].mxu0 }
 0x170   : > { %v424_v32 = vpop.f32.mrb[3].mxu0 }
 0x171   : > { %1437 = vtanh.f32 %v512_v30  ;;  %v1258_v34 = vmul.f32 -1.442695, %v512_v30 }
 0x173   : > { %1439 = vpow2.f32 %v1258_v34 }
 0x17b   : > { %v1438_v33 = vpop.eup %1437 }
 0x17c   : > { %522 = vrot.lane.b32.xlu0 %v1438_v33, %s1512_s20 }
 0x17d   : > { %v1440_v35 = vpop.eup %1439 }
 0x17e   : > { %v516_v36 = vadd.f32 1.0, %v1440_v35 }
 0x180   : > { %1441 = vrcp.f32 %v516_v36 }
 0x18a   : > { %v1442_v37 = vpop.eup %1441 }
 0x18b   : > { %v520_v40 = vmul.f32 0.0, %v1442_v37 }
 0x1ee   : > { %v523_v38 = vpop.permute.xlu0 %522 }
 0x1ef   : > { %v525_v39 = vmul.f32 %v1442_v37, %v523_v38 }
 0x1f1   : > { %527 = vrot.lane.b32.xlu1 %v525_v39, %s1513_s21 }
 0x263   : > { %v528_v41 = vpop.permute.xlu1 %527 }
 0x264   : > { %v530_v42 = vadd.f32 %v528_v41, %v520_v40 }
 0x266   : > { %1443 = vtanh.f32 %v530_v42 }
 0x270   : > { %v1444_v43 = vpop.eup %1443 }
 0x271   : > { %533 = vrot.lane.b32.xlu0 %v1444_v43, %s1512_s20 }
 0x2e3   : > { %v534_v44 = vpop.permute.xlu0 %533 }
 0x2e4   : > { %v536_v45 = vmul.f32 %v1442_v37, %v534_v44 }
 0x2e6   : > { %v537_v46 = vpack.c.bf16 %v536_v45, %v536_v45 }
 0x2e8   : > { %539 = vrot.lane.b32.xlu1 %v537_v46, %s1513_s21 }
 0x35a   : > { %v540_v47 = vpop.permute.xlu1 %539 }
 0x35b   : > { %1348 = vmatmul.mubr.msk.bf16.vlgmr.msra.gmra.mrb[4].mxu1 %vm468_vm6, %v540_v47 }
 0x35c   : > { %1352 = vmatpush3.bf16.msra.mxu1 %v1580_v4  ;;  %1355 = vmatprep.mubr.msk.bf16.mxu1 %vm1511_vm0, %v1510_v3 }
 0x35d   : > { %1353 = vmatprep.subr.bf16.mxu1 %v1510_v3 }
 0x360   : > { %1354 = vmatpush3.bf16.msra.mxu1 %v1594_v10 }
 0x361   : > { %1367 = vmatprep.subr.bf16.mxu1 %v1510_v3 }
 0x42e   : > { %v578_v48 = vpop.f32.mrb[4].mxu1 }
 0x42f   : > { %v584_v49 = vadd.f32 %v578_v48, %v424_v32  ;;  %v1349_v50 = vpop.f32.mrb[5].mxu1 }
 0x430   : > { %v581_v51 = vpop.f32.mrb[6].mxu1 }
 0x431   : > { %1445 = vtanh.f32 %v584_v49  ;;  %v1350_v52 = vpop.f32.mrb[7].mxu1  ;;  %v1260_v54 = vmul.f32 -1.442695, %v584_v49 }
 0x433   : > { %1447 = vpow2.f32 %v1260_v54 }
 0x43b   : > { %v1446_v53 = vpop.eup %1445 }
 0x43c   : > { %594 = vrot.lane.b32.xlu0 %v1446_v53, %s1512_s20 }
 0x43d   : > { %v1448_v55 = vpop.eup %1447 }
 0x43e   : > { %v588_v56 = vadd.f32 1.0, %v1448_v55 }
 0x440   : > { %1449 = vrcp.f32 %v588_v56 }
 0x44a   : > { %v1450_v57 = vpop.eup %1449 }
 0x44b   : > { %v592_v60 = vmul.f32 %v1450_v57, %v530_v42 }
 0x4ae   : > { %v595_v58 = vpop.permute.xlu0 %594 }
 0x4af   : > { %v597_v59 = vmul.f32 %v1450_v57, %v595_v58 }
 0x4b1   : > { %599 = vrot.lane.b32.xlu1 %v597_v59, %s1513_s21 }
 0x523   : > { %v600_v61 = vpop.permute.xlu1 %599 }
 0x524   : > { %v602_v62 = vadd.f32 %v600_v61, %v592_v60 }
 0x526   : > { %1451 = vtanh.f32 %v602_v62 }
 0x530   : > { %v1452_v63 = vpop.eup %1451 }
 0x531   : > { %605 = vrot.lane.b32.xlu0 %v1452_v63, %s1512_s20 }
 0x5a3   : > { %v606_v0 = vpop.permute.xlu0 %605 }
 0x5a4   : > { %v608_v1 = vmul.f32 %v1450_v57, %v606_v0 }
 0x5a6   : > { %v609_v2 = vpack.c.bf16 %v608_v1, %v608_v1 }
 0x5a8   : > { %611 = vrot.lane.b32.xlu1 %v609_v2, %s1513_s21 }
 0x61a   : > { %v612_v5 = vpop.permute.xlu1 %611 }
 0x61b   : > { %1356 = vmatmul.mubr.msk.bf16.vlgmr.msra.gmra.mrb[8].mxu1 %vm468_vm6, %v612_v5 }
 0x61c   : > { %1368 = vmatpush3.bf16.msra.mxu1 %v1580_v4  ;;  %1371 = vmatprep.mubr.msk.bf16.mxu1 %vm1511_vm0, %v1510_v3 }
 0x61d   : > { %1369 = vmatprep.subr.bf16.mxu1 %v1510_v3 }
 0x620   : > { %1370 = vmatpush3.bf16.msra.mxu1 %v1594_v10 }
 0x621   : > { %1383 = vmatprep.subr.bf16.mxu1 %v1510_v3 }
 0x6ee   : > { %v650_v6 = vpop.f32.mrb[8].mxu1 }
 0x6ef   : > { %v656_v7 = vadd.f32 %v1626_v28, %v650_v6  ;;  %v1357_v8 = vpop.f32.mrb[9].mxu1 }
 0x6f0   : > { %v653_v9 = vpop.f32.mrb[10].mxu1 }
 0x6f1   : > { %1453 = vtanh.f32 %v656_v7  ;;  %v1358_v11 = vpop.f32.mrb[11].mxu1  ;;  %v1262_v14 = vmul.f32 -1.442695, %v656_v7 }
 0x6f3   : > { %1455 = vpow2.f32 %v1262_v14 }
 0x6fb   : > { %v1454_v12 = vpop.eup %1453 }
 0x6fc   : > { %666 = vrot.lane.b32.xlu0 %v1454_v12, %s1512_s20 }
 0x6fd   : > { %v1456_v15 = vpop.eup %1455 }
 0x6fe   : > { %v660_v16 = vadd.f32 1.0, %v1456_v15 }
 0x700   : > { %1457 = vrcp.f32 %v660_v16 }
 0x70a   : > { %v1458_v17 = vpop.eup %1457 }
 0x70b   : > { %v664_v22 = vmul.f32 %v1458_v17, %v602_v62 }
 0x76e   : > { %v667_v18 = vpop.permute.xlu0 %666 }
 0x76f   : > { %v669_v19 = vmul.f32 %v1458_v17, %v667_v18 }
 0x771   : > { %671 = vrot.lane.b32.xlu1 %v669_v19, %s1513_s21 }
 0x775   : > { %303 = vperm.xlu1 %1427, %v284_v20  }
 0x779   : > { %309 = vperm.xlu1 %1427, %v286_v21  }
 0x7e3   : > { %v672_v23 = vpop.permute.xlu1 %671 }
 0x7e4   : > { %v674_v24 = vadd.f32 %v672_v23, %v664_v22 }
 0x7e6   : > { %1459 = vtanh.f32 %v674_v24 }
 0x7f0   : > { %v1460_v25 = vpop.eup %1459 }
 0x7f1   : > { %677 = vrot.lane.b32.xlu0 %v1460_v25, %s1512_s20 }
 0x7f4   : > { %v304_v32 = vpop.permute.xlu1 %303 }
 0x7f5   : > { %306 = vperm.xlu0 %1426, %v285_v26   ;;  %vm318_vm7 = vcmp.eq.s32.totalorder %v304_v32, %v1610_v13 }
 0x7f6   : > { %v1244_v35 = vsel %vm318_vm7, 1.0, %v1510_v3 }
 0x7f8   : > { %v310_v33 = vpop.permute.xlu1 %309 }
 0x7f9   : > { %312 = vperm.xlu0 %1426, %v287_v27   ;;  %vm320_vm9 = vcmp.eq.s32.totalorder %v310_v33, %v1610_v13 }
 0x7fa   : > { %v1246_v39 = vsel %vm320_vm9, 1.0, %v1510_v3 }
 0x863   : > { %v678_v28 = vpop.permute.xlu0 %677 }
 0x864   : > { %v680_v29 = vmul.f32 %v1458_v17, %v678_v28 }
 0x866   : > { %v681_v30 = vpack.c.bf16 %v680_v29, %v680_v29 }
 0x868   : > { %683 = vrot.lane.b32.xlu1 %v681_v30, %s1513_s21 }
 0x874   : > { %v307_v34 = vpop.permute.xlu0 %306 }
 0x875   : > { %vm319_vm8 = vcmp.eq.s32.totalorder %v307_v34, %v1610_v13 }
 0x876   : > { %v1245_v36 = vsel %vm319_vm8, 1.0, %v1510_v3 }
 0x877   : > { %v340_v37 = vpack.c.bf16 %v1245_v36, %v1244_v35 }
 0x878   : > { %v313_v38 = vpop.permute.xlu0 %312 }
 0x879   : > { %vm321_vm10 = vcmp.eq.s32.totalorder %v313_v38, %v1610_v13  ;;  %1331 = vmatprep.mubr.msk.bf16.mxu0 %vm374_vm5, %v340_v37 }
 0x87a   : > { %v1247_v40 = vsel %vm321_vm10, 1.0, %v1510_v3 }
 0x87b   : > { %v341_v41 = vpack.c.bf16 %v1247_v40, %v1246_v39 }
 0x87d   : > { %1332 = vmatmul.mubr.msk.bf16.gmra.mrb[4].mxu0 %vm374_vm5, %v341_v41 }
 0x87e   : > { %1363 = vmatprep.mubr.msk.bf16.mxu0 %vm1511_vm0, %v1510_v3 }
 0x8da   : > { %v684_v42 = vpop.permute.xlu1 %683 }
 0x8db   : > { %1364 = vmatmul.mubr.msk.bf16.vlgmr.msra.gmra.mrb[8].mxu0 %vm468_vm6, %v684_v42 }
 0x8dc   : > { %1376 = vmatpush3.bf16.msra.mxu0 %v1580_v4  ;;  %1379 = vmatprep.mubr.msk.bf16.mxu0 %vm1511_vm0, %v1510_v3 }
 0x8dd   : > { %1377 = vmatprep.subr.bf16.mxu0 %v1510_v3 }
 0x8e0   : > { %1378 = vmatpush3.bf16.msra.mxu0 %v1594_v10 }
 0x8e1   : > { %1391 = vmatprep.subr.bf16.mxu0 %v1510_v3 }
 0x950   : > { %v1680_v13 = vpop.f32.mrb[4].mxu0 }
 0x951   : > { %v437_v43 = vpop.f32.mrb[5].mxu0 }
 0x952   : > { %v1682_v44 = vpop.f32.mrb[6].mxu0 }
 0x953   : > { %v1684_v45 = vpop.f32.mrb[7].mxu0 }
 0x9ae   : > { %v722_v46 = vpop.f32.mrb[8].mxu0 }
 0x9af   : > { %v728_v47 = vadd.f32 %v1628_v31, %v722_v46  ;;  %v1365_v48 = vpop.f32.mrb[9].mxu0 }
 0x9b0   : > { %v725_v49 = vpop.f32.mrb[10].mxu0 }
 0x9b1   : > { %1461 = vtanh.f32 %v728_v47  ;;  %v1366_v50 = vpop.f32.mrb[11].mxu0  ;;  %v1264_v52 = vmul.f32 -1.442695, %v728_v47 }
 0x9b3   : > { %1463 = vpow2.f32 %v1264_v52 }
 0x9bb   : > { %v1462_v51 = vpop.eup %1461 }
 0x9bc   : > { %738 = vrot.lane.b32.xlu0 %v1462_v51, %s1512_s20 }
 0x9bd   : > { %v1464_v53 = vpop.eup %1463 }
 0x9be   : > { %v732_v54 = vadd.f32 1.0, %v1464_v53 }
 0x9c0   : > { %1465 = vrcp.f32 %v732_v54 }
 0x9ca   : > { %v1466_v55 = vpop.eup %1465 }
 0x9cb   : > { %v736_v58 = vmul.f32 %v1466_v55, %v674_v24 }
 0xa2e   : > { %v739_v56 = vpop.permute.xlu0 %738 }
 0xa2f   : > { %v741_v57 = vmul.f32 %v1466_v55, %v739_v56 }
 0xa31   : > { %743 = vrot.lane.b32.xlu1 %v741_v57, %s1513_s21 }
 0xaa3   : > { %v744_v59 = vpop.permute.xlu1 %743 }
 0xaa4   : > { %v746_v31 = vadd.f32 %v744_v59, %v736_v58 }
 0xaa6   : > { %1467 = vtanh.f32 %v746_v31 }
 0xab0   : > { %v1468_v60 = vpop.eup %1467 }
 0xab1   : > { %749 = vrot.lane.b32.xlu0 %v1468_v60, %s1512_s20 }
 0xb23   : > { %v750_v61 = vpop.permute.xlu0 %749 }
 0xb24   : > { %v752_v62 = vmul.f32 %v1466_v55, %v750_v61 }
 0xb26   : > { %v753_v63 = vpack.c.bf16 %v752_v62, %v752_v62 }
 0xb28   : > { %755 = vrot.lane.b32.xlu1 %v753_v63, %s1513_s21 }
 0xb9a   : > { %v756_v0 = vpop.permute.xlu1 %755 }
 0xb9b   : > { %1372 = vmatmul.mubr.msk.bf16.vlgmr.msra.gmra.mrb[12].mxu1 %vm468_vm6, %v756_v0 }
 0xb9c   : > { %1384 = vmatpush3.bf16.msra.mxu1 %v1580_v4  ;;  %1387 = vmatprep.mubr.msk.bf16.mxu1 %vm1511_vm0, %v1510_v3 }
 0xb9d   : > { %1385 = vmatprep.subr.bf16.mxu1 %v1510_v3 }
 0xba0   : > { %1386 = vmatpush3.bf16.msra.mxu1 %v1594_v10 }
 0xba1   : > { %1399 = vmatprep.subr.bf16.mxu1 %v1510_v3 }
 0xc6e   : > { %v794_v1 = vpop.f32.mrb[12].mxu1 }
 0xc6f   : > { %v800_v2 = vadd.f32 %v794_v1, %v437_v43  ;;  %v1373_v5 = vpop.f32.mrb[13].mxu1 }
 0xc70   : > { %v797_v6 = vpop.f32.mrb[14].mxu1 }
 0xc71   : > { %1469 = vtanh.f32 %v800_v2  ;;  %v1374_v7 = vpop.f32.mrb[15].mxu1  ;;  %v1266_v9 = vmul.f32 -1.442695, %v800_v2 }
 0xc73   : > { %1471 = vpow2.f32 %v1266_v9 }
 0xc7b   : > { %v1470_v8 = vpop.eup %1469 }
 0xc7c   : > { %810 = vrot.lane.b32.xlu0 %v1470_v8, %s1512_s20 }
 0xc7d   : > { %v1472_v11 = vpop.eup %1471 }
 0xc7e   : > { %v804_v12 = vadd.f32 1.0, %v1472_v11 }
 0xc80   : > { %1473 = vrcp.f32 %v804_v12 }
 0xc8a   : > { %v1474_v14 = vpop.eup %1473 }
 0xc8b   : > { %v808_v17 = vmul.f32 %v1474_v14, %v746_v31 }
 0xcee   : > { %v811_v15 = vpop.permute.xlu0 %810 }
 0xcef   : > { %v813_v16 = vmul.f32 %v1474_v14, %v811_v15 }
 0xcf1   : > { %815 = vrot.lane.b32.xlu1 %v813_v16, %s1513_s21 }
 0xd63   : > { %v816_v18 = vpop.permute.xlu1 %815 }
 0xd64   : > { %v818_v19 = vadd.f32 %v816_v18, %v808_v17  ;;  %v1434_v17 = vld [vmem:[%s1758_s3] sm:$0xff]   ;;  %v1435_v18 = vld [vmem:[%s1758_s3 + $0x8] sm:$0xff]  }
 0xd66   : > { %1475 = vtanh.f32 %v818_v19 }
 0xd70   : > { %v1476_v20 = vpop.eup %1475 }
 0xd71   : > { %821 = vrot.lane.b32.xlu0 %v1476_v20, %s1512_s20 }
 0xde3   : > { %v822_v21 = vpop.permute.xlu0 %821 }
 0xde4   : > { %v824_v22 = vmul.f32 %v1474_v14, %v822_v21 }
 0xde6   : > { %v825_v23 = vpack.c.bf16 %v824_v22, %v824_v22 }
 0xde8   : > { %827 = vrot.lane.b32.xlu1 %v825_v23, %s1513_s21 }
 0xe5a   : > { %v828_v24 = vpop.permute.xlu1 %827 }
 0xe5b   : > { %1380 = vmatmul.mubr.msk.bf16.vlgmr.msra.gmra.mrb[12].mxu0 %vm468_vm6, %v828_v24  ;;  %v1436_v24 = vld [vmem:[%s1760_s5] sm:$0xff]  }
 0xe5c   : > { %1392 = vmatpush3.bf16.msra.mxu0 %v1580_v4  ;;  %1395 = vmatprep.mubr.msk.bf16.mxu0 %vm1511_vm0, %v1510_v3 }
 0xe5d   : > { %1393 = vmatprep.subr.bf16.mxu0 %v1510_v3 }
 0xe60   : > { %1394 = vmatpush3.bf16.msra.mxu0 %v1594_v10 }
 0xe61   : > { %1407 = vmatprep.subr.bf16.mxu0 %v1510_v3 }
 0xf2e   : > { %v866_v25 = vpop.f32.mrb[12].mxu0 }
 0xf2f   : > { %v872_v26 = vadd.f32 %v866_v25, %v1684_v45  ;;  %v1381_v27 = vpop.f32.mrb[13].mxu0 }
 0xf30   : > { %v869_v28 = vpop.f32.mrb[14].mxu0 }
 0xf31   : > { %1477 = vtanh.f32 %v872_v26  ;;  %v1382_v29 = vpop.f32.mrb[15].mxu0  ;;  %v1268_v4 = vmul.f32 -1.442695, %v872_v26 }
 0xf33   : > { %1479 = vpow2.f32 %v1268_v4 }
 0xf3b   : > { %v1478_v30 = vpop.eup %1477 }
 0xf3c   : > { %882 = vrot.lane.b32.xlu0 %v1478_v30, %s1512_s20 }
 0xf3d   : > { %v1480_v32 = vpop.eup %1479 }
 0xf3e   : > { %v876_v33 = vadd.f32 1.0, %v1480_v32 }
 0xf40   : > { %1481 = vrcp.f32 %v876_v33  ;;  %v1277_v33 = vld [vmem:[%s1761_s6] ss:$0 sm:$0xff] }
 0xf4a   : > { %v1482_v34 = vpop.eup %1481 }
 0xf4b   : > { %v880_v36 = vmul.f32 %v1482_v34, %v818_v19 }
 0xfae   : > { %v883_v35 = vpop.permute.xlu0 %882 }
 0xfaf   : > { %v885_v10 = vmul.f32 %v1482_v34, %v883_v35 }
 0xfb1   : > { %887 = vrot.lane.b32.xlu1 %v885_v10, %s1513_s21 }
0x1023   : > { %v888_v37 = vpop.permute.xlu1 %887 }
0x1024   : > { %v890_v38 = vadd.f32 %v888_v37, %v880_v36 }
0x1026   : > { %1483 = vtanh.f32 %v890_v38 }
0x1030   : > { %v1484_v39 = vpop.eup %1483 }
0x1031   : > { %893 = vrot.lane.b32.xlu0 %v1484_v39, %s1512_s20 }
0x10a3   : > { %v894_v40 = vpop.permute.xlu0 %893 }
0x10a4   : > { %v896_v41 = vmul.f32 %v1482_v34, %v894_v40 }
0x10a6   : > { %v897_v42 = vpack.c.bf16 %v896_v41, %v896_v41 }
0x10a8   : > { %899 = vrot.lane.b32.xlu1 %v897_v42, %s1513_s21 }
0x111a   : > { %v900_v43 = vpop.permute.xlu1 %899 }
0x111b   : > { %1388 = vmatmul.mubr.msk.bf16.vlgmr.msra.gmra.mrb[16].mxu1 %vm468_vm6, %v900_v43 }
0x111c   : > { %1403 = vmatprep.mubr.msk.bf16.mxu1 %vm1511_vm0, %v1510_v3  ;;  %1400 = vmatpush3.bf16.msra.mxu1 %v1434_v17 }
0x111d   : > { %1401 = vmatprep.subr.bf16.mxu1 %v1510_v3 }
0x1120   : > { %1402 = vmatpush3.bf16.msra.mxu1 %v1435_v18 }
0x11ee   : > { %v938_v45 = vpop.f32.mrb[16].mxu1 }
0x11ef   : > { %v944_v46 = vadd.f32 %v1680_v13, %v938_v45  ;;  %v1389_v47 = vpop.f32.mrb[17].mxu1 }
0x11f0   : > { %v941_v48 = vpop.f32.mrb[18].mxu1 }
0x11f1   : > { %1485 = vtanh.f32 %v944_v46  ;;  %v1390_v49 = vpop.f32.mrb[19].mxu1  ;;  %v1270_v51 = vmul.f32 -1.442695, %v944_v46 }
0x11f3   : > { %1487 = vpow2.f32 %v1270_v51 }
0x11fb   : > { %v1486_v50 = vpop.eup %1485 }
0x11fc   : > { %954 = vrot.lane.b32.xlu0 %v1486_v50, %s1512_s20 }
0x11fd   : > { %v1488_v52 = vpop.eup %1487 }
0x11fe   : > { %v948_v53 = vadd.f32 1.0, %v1488_v52 }
0x1200   : > { %1489 = vrcp.f32 %v948_v53 }
0x120a   : > { %v1490_v54 = vpop.eup %1489 }
0x120b   : > { %v952_v57 = vmul.f32 %v1490_v54, %v890_v38 }
0x126e   : > { %v955_v55 = vpop.permute.xlu0 %954 }
0x126f   : > { %v957_v56 = vmul.f32 %v1490_v54, %v955_v55 }
0x1271   : > { %959 = vrot.lane.b32.xlu1 %v957_v56, %s1513_s21 }
0x12e3   : > { %v960_v58 = vpop.permute.xlu1 %959 }
0x12e4   : > { %v962_v13 = vadd.f32 %v960_v58, %v952_v57 }
0x12e6   : > { %1491 = vtanh.f32 %v962_v13 }
0x12f0   : > { %v1492_v59 = vpop.eup %1491 }
0x12f1   : > { %965 = vrot.lane.b32.xlu0 %v1492_v59, %s1512_s20 }
0x1363   : > { %v966_v31 = vpop.permute.xlu0 %965 }
0x1364   : > { %v968_v60 = vmul.f32 %v1490_v54, %v966_v31 }
0x1366   : > { %v969_v61 = vpack.c.bf16 %v968_v60, %v968_v60 }
0x1368   : > { %971 = vrot.lane.b32.xlu1 %v969_v61, %s1513_s21 }
0x13da   : > { %v972_v62 = vpop.permute.xlu1 %971 }
0x13db   : > { %1396 = vmatmul.mubr.msk.bf16.vlgmr.msra.gmra.mrb[16].mxu0 %vm468_vm6, %v972_v62 }
0x13dc   : > { %1409 = vmatprep.mubr.msk.bf16.mxu0 %vm1511_vm0, %v1510_v3  ;;  %1408 = vmatpush3.bf16.msra.mxu0 %v1436_v24  ;;  %v1273_v3 = vld [vmem:[%s1759_s4] ss:$0 sm:$0xff] }
0x14ae   : > { %v1010_v63 = vpop.f32.mrb[16].mxu0 }
0x14af   : > { %v1016_v0 = vadd.f32 %v1682_v44, %v1010_v63  ;;  %v1397_v1 = vpop.f32.mrb[17].mxu0 }
0x14b0   : > { %v1013_v2 = vpop.f32.mrb[18].mxu0 }
0x14b1   : > { %1493 = vtanh.f32 %v1016_v0  ;;  %v1398_v5 = vpop.f32.mrb[19].mxu0  ;;  %v1272_v7 = vmul.f32 -1.442695, %v1016_v0 }
0x14b3   : > { %1495 = vpow2.f32 %v1272_v7 }
0x14bb   : > { %v1494_v6 = vpop.eup %1493 }
0x14bc   : > { %1026 = vrot.lane.b32.xlu0 %v1494_v6, %s1512_s20 }
0x14bd   : > { %v1496_v8 = vpop.eup %1495 }
0x14be   : > { %v1020_v9 = vadd.f32 1.0, %v1496_v8 }
0x14c0   : > { %1497 = vrcp.f32 %v1020_v9 }
0x14ca   : > { %v1498_v11 = vpop.eup %1497 }
0x14cb   : > { %v1024_v15 = vmul.f32 %v1498_v11, %v962_v13 }
0x152e   : > { %v1027_v12 = vpop.permute.xlu0 %1026 }
0x152f   : > { %v1029_v14 = vmul.f32 %v1498_v11, %v1027_v12 }
0x1531   : > { %1031 = vrot.lane.b32.xlu1 %v1029_v14, %s1513_s21 }
0x15a3   : > { %v1032_v16 = vpop.permute.xlu1 %1031 }
0x15a4   : > { %v1034_v44 = vadd.f32 %v1032_v16, %v1024_v15 }
0x15a6   : > { %1499 = vtanh.f32 %v1034_v44 }
0x15b0   : > { %v1500_v19 = vpop.eup %1499 }
0x15b1   : > { %1037 = vrot.lane.b32.xlu0 %v1500_v19, %s1512_s20 }
0x1623   : > { %v1038_v20 = vpop.permute.xlu0 %1037 }
0x1624   : > { %v1040_v21 = vmul.f32 %v1498_v11, %v1038_v20 }
0x1626   : > { %v1041_v22 = vpack.c.bf16 %v1040_v21, %v1040_v21 }
0x1628   : > { %1054 = vrot.lane.b32.xlu1 %v1041_v22, %s1513_s21 }
0x169a   : > { %v1055_v23 = vpop.permute.xlu1 %1054 }
0x169b   : > { %1404 = vmatmul.mubr.msk.bf16.vlgmr.msra.gmra.mrb[20].mxu1 %vm468_vm6, %v1055_v23 }
0x176e   : > { %v1105_v25 = vpop.f32.mrb[20].mxu1 }
0x176f   : > { %v1106_v26 = vadd.f32 %v1273_v3, %v1105_v25  ;;  %v1405_v27 = vpop.f32.mrb[21].mxu1 }
0x1770   : > { %v1108_v28 = vpop.f32.mrb[22].mxu1 }
0x1771   : > { %vm1111_vm11 = vcmp.gt.f32.partialorder %v1106_v26, 0.0  ;;  %v1112_v29 = vmul.f32 0.01, %v1106_v26  ;;  %v1406_v30 = vpop.f32.mrb[23].mxu1 }
0x1773   : > { %v1113_v4 = vsel %vm1111_vm11, %v1106_v26, %v1112_v29 }
0x1774   : > { %v1114_v32 = vpack.c.bf16 %v1113_v4, %v1113_v4 }
0x1776   : > { %1410 = vmatmul.mubr.msk.bf16.vlgmr.msra.gmra.mrb[20].mxu0 %vm1130_vm12, %v1114_v32 }
0x1849   : > { %v1168_v34 = vpop.f32.mrb[20].mxu0 }
0x184a   : > { %v1169_v35 = vadd.f32 %v1277_v33, %v1168_v34  ;;  %v1411_v10 = vpop.f32.mrb[21].mxu0 }
0x184b   : > { %v1171_v36 = vpop.f32.mrb[22].mxu0 }
0x184c   : > { %vm1174_vm13 = vcmp.gt.f32.partialorder %v1169_v35, 0.0  ;;  %v1175_v37 = vmul.f32 0.01, %v1169_v35  ;;  %v1412_v38 = vpop.f32.mrb[23].mxu0 }
0x184e   : > { %v1176_v39 = vsel %vm1174_vm13, %v1169_v35, %v1175_v37 }
0x184f   : > { %1178 = vst.msk [vmem:[%s278_s14] sm:$0xff] %vm1177_vm14, %v1176_v39 }
0x1850 PF: > { %s17_s24 = sadd.s32 1, %s1507_s24  }
0x1851   : > { %p14_p5 = scmp.ge.s32.totalorder %s17_s24, 4  }
0x1853   :  { %16 = sbr.rel (!%p14_p5) target bundleno = 1 (0x1), region = 78 }

</bundles_post_ra>
